<compile_context>
chip_gen: v5e
topology: v5e:2x2
jax: 0.10.0
libtpu: 0.0.40
codegen_flags: <defaults>
</compile_context>

<pallas_src>
import functools

import jax
import jax.numpy as jnp
from jax.experimental import pallas as pl
from jax.experimental.pallas import tpu as pltpu


def _round_up(x: int, m: int) -> int:
    return ((x + m - 1) // m) * m


def _linear_kernel(x_ref, w_ref, b_ref, o_ref, acc_ref, *, apply_relu: bool):
    k = pl.program_id(2)

    @pl.when(k == 0)
    def _init():
        acc_ref[...] = jnp.zeros_like(acc_ref)

    x = x_ref[...]
    if apply_relu:
        # dropout (identity at inference) then ReLU, fused with the matmul
        x = jnp.maximum(x, 0.0)

    # bf16 operands on the MXU, f32 accumulation.
    acc_ref[...] += jnp.dot(
        x.astype(jnp.bfloat16), w_ref[...], preferred_element_type=jnp.float32
    )

    @pl.when(k == pl.num_programs(2) - 1)
    def _epilogue():
        # bias added exactly once, in f32, after the full K reduction
        o_ref[...] = (acc_ref[...] + b_ref[...]).astype(o_ref.dtype)


def pallas_linear(x, w, b, apply_relu: bool, *,
                  tm_target: int = 256, tn_target: int = 512, tk_target: int = 512):
    """y = (relu(x) if apply_relu else x) @ w + b  with a tiled Pallas kernel.

    x: (N, K) f32, w: (K, M) bf16, b: (M,) f32. Returns (N, M) f32.
    """
    n, k = x.shape
    k2, m = w.shape
    assert k == k2

    # Tile sizes: sublane axis multiples of 8, lane axis multiples of 128,
    # capped by the targets (256/512-aligned once the problem is big enough).
    tm = min(tm_target, _round_up(n, 8))
    tn = min(tn_target, _round_up(m, 128))
    tk = min(tk_target, _round_up(k, 128))

    n_p = _round_up(n, tm)
    m_p = _round_up(m, tn)
    k_p = _round_up(k, tk)

    # Zero-pad to tile multiples (zeros are harmless: relu(0)=0 and 0*w=0).
    x_p = x if (n_p == n and k_p == k) else jnp.pad(x, ((0, n_p - n), (0, k_p - k)))
    w_p = w if (k_p == k and m_p == m) else jnp.pad(w, ((0, k_p - k), (0, m_p - m)))
    b_p = b if m_p == m else jnp.pad(b, (0, m_p - m))
    b2d = b_p.reshape(1, m_p).astype(jnp.float32)

    grid = (n_p // tm, m_p // tn, k_p // tk)

    cost = pl.CostEstimate(
        flops=2 * n_p * k_p * m_p,
        transcendentals=0,
        bytes_accessed=(x_p.size * 4 + w_p.size * 2 + b2d.size * 4 + n_p * m_p * 4),
    )

    out_p = pl.pallas_call(
        functools.partial(_linear_kernel, apply_relu=apply_relu),
        out_shape=jax.ShapeDtypeStruct((n_p, m_p), jnp.float32),
        grid_spec=pltpu.PrefetchScalarGridSpec(
            num_scalar_prefetch=0,
            grid=grid,
            in_specs=[
                pl.BlockSpec((tm, tk), lambda i, j, kk: (i, kk)),
                pl.BlockSpec((tk, tn), lambda i, j, kk: (kk, j)),
                pl.BlockSpec((1, tn), lambda i, j, kk: (0, j)),
            ],
            out_specs=pl.BlockSpec((tm, tn), lambda i, j, kk: (i, j)),
            scratch_shapes=[pltpu.VMEM((tm, tn), jnp.float32)],
        ),
        compiler_params=pltpu.CompilerParams(
            dimension_semantics=("parallel", "parallel", "arbitrary"),
            vmem_limit_bytes=48 * 1024 * 1024,
        ),
        cost_estimate=cost,
    )(x_p, w_p, b2d)

    return out_p[:n, :m]


def init_mlp_params(key, in_feats, n_hidden, n_classes, n_layers):
    """Deterministic init mimicking nn.Linear default (uniform +/- 1/sqrt(fan_in)).

    Weights are stored transposed to (in, out) and in bf16 (MXU operand dtype);
    biases stay f32.
    """
    dims = [in_feats] + [n_hidden] * n_layers + [n_classes]
    params = []
    for i in range(len(dims) - 1):
        fan_in, fan_out = dims[i], dims[i + 1]
        key, kw, kb = jax.random.split(key, 3)
        bound = 1.0 / jnp.sqrt(jnp.float32(fan_in))
        w = jax.random.uniform(kw, (fan_in, fan_out), jnp.float32, -bound, bound)
        b = jax.random.uniform(kb, (fan_out,), jnp.float32, -bound, bound)
        params.append((w.astype(jnp.bfloat16), b))
    return params


def mlp_forward(params, features):
    h = features
    for i, (w, b) in enumerate(params):
        # i != 0: dropout (eval -> identity) then ReLU, fused into the kernel
        h = pallas_linear(h, w, b, apply_relu=(i != 0))
    return h


def mlp_reference(params, features):
    """Pure-JAX reference with identical bf16-operand / f32-accumulate numerics."""
    h = features
    for i, (w, b) in enumerate(params):
        if i != 0:
            h = jnp.maximum(h, 0.0)
        h = jnp.dot(h.astype(jnp.bfloat16), w, preferred_element_type=jnp.float32) + b
    return h


if __name__ == "__main__":
    # Small shapes consistent with the module's forward: features is (batch, in_feats).
    batch, in_feats, n_hidden, n_classes, n_layers = 8, 16, 32, 8, 2

    key = jax.random.PRNGKey(0)
    key, kx = jax.random.split(key)
    features = jax.random.normal(kx, (batch, in_feats), jnp.float32)

    params = init_mlp_params(key, in_feats, n_hidden, n_classes, n_layers)

    out = mlp_forward(params, features)
    out = jax.block_until_ready(out)

    ref = mlp_reference(params, features)
    assert out.shape == (batch, n_classes)
    assert jnp.allclose(out, ref, atol=1e-3, rtol=1e-3), (
        float(jnp.max(jnp.abs(out - ref)))
    )

    print("KERNEL_OK")
</pallas_src>

<mosaic_0001>
module attributes {stable_mosaic.version = 11 : i64} {
  func.func @_linear_kernel(%arg0: i32, %arg1: i32, %arg2: i32, %arg3: memref<8x128xf32, #tpu.memory_space<vmem>>, %arg4: memref<128x128xbf16, #tpu.memory_space<vmem>>, %arg5: memref<1x128xf32, #tpu.memory_space<vmem>>, %arg6: memref<8x128xf32, #tpu.memory_space<vmem>>, %arg7: memref<8x128xf32, #tpu.memory_space<vmem>>) attributes {dimension_semantics = [#tpu.dimension_semantics<parallel>, #tpu.dimension_semantics<parallel>, #tpu.dimension_semantics<arbitrary>], iteration_bounds = array<i64: 1, 1, 1>, scalar_prefetch = 0 : i64, scratch_operands = 1 : i64, tpu.core_type = #tpu.core_type<tc>, window_params = [{transform_indices = @transform_0, window_bounds = array<i64: 8, 128>}, {transform_indices = @transform_1, window_bounds = array<i64: 128, 128>}, {transform_indices = @transform_2, window_bounds = array<i64: 1, 128>}, {transform_indices = @transform_3, window_bounds = array<i64: 8, 128>}]} {
    %c0_i32 = arith.constant 0 : i32
    %0 = arith.cmpi eq, %arg2, %c0_i32 : i32
    %1 = arith.extui %0 : i1 to i32
    %c0_i32_0 = arith.constant 0 : i32
    %2 = arith.cmpi ne, %1, %c0_i32_0 : i32
    scf.if %2 {
      %cst_10 = arith.constant 0.000000e+00 : f32
      %13 = vector.broadcast %cst_10 : f32 to vector<8x128xf32>
      %c0_11 = arith.constant 0 : index
      %c0_12 = arith.constant 0 : index
      %14 = vector.load %arg7[%c0_11, %c0_12] : memref<8x128xf32, #tpu.memory_space<vmem>>, vector<8x128xf32>
      tpu.vector_store %arg7[%c0_11, %c0_12], %13 {strides = array<i32>} : memref<8x128xf32, #tpu.memory_space<vmem>>, vector<8x128xf32>,
    } else {
    }
    %c0 = arith.constant 0 : index
    %c0_1 = arith.constant 0 : index
    %3 = vector.load %arg3[%c0, %c0_1] : memref<8x128xf32, #tpu.memory_space<vmem>>, vector<8x128xf32>
    %c0_2 = arith.constant 0 : index
    %c0_3 = arith.constant 0 : index
    %4 = vector.load %arg7[%c0_2, %c0_3] : memref<8x128xf32, #tpu.memory_space<vmem>>, vector<8x128xf32>
    %5 = arith.truncf %3 : vector<8x128xf32> to vector<8x128xbf16>
    %c0_4 = arith.constant 0 : index
    %c0_5 = arith.constant 0 : index
    %6 = vector.load %arg4[%c0_4, %c0_5] : memref<128x128xbf16, #tpu.memory_space<vmem>>, vector<128x128xbf16>
    %cst = arith.constant dense<0.000000e+00> : vector<8x128xf32>
    %7 = tpu.matmul %5, %6, %cst {dimension_numbers = #tpu.dot_dimension_numbers<[1], [0], [0], [1], [0, 0, 1, 1], [], []>} : vector<8x128xbf16>, vector<128x128xbf16>, vector<8x128xf32> -> vector<8x128xf32>
    %8 = arith.addf %4, %7 : vector<8x128xf32>
    %c0_6 = arith.constant 0 : index
    %c0_7 = arith.constant 0 : index
    %9 = vector.load %arg7[%c0_6, %c0_7] : memref<8x128xf32, #tpu.memory_space<vmem>>, vector<8x128xf32>
    tpu.vector_store %arg7[%c0_6, %c0_7], %8 {strides = array<i32>} : memref<8x128xf32, #tpu.memory_space<vmem>>, vector<8x128xf32>,
    %c0_i32_8 = arith.constant 0 : i32
    %10 = arith.cmpi eq, %arg2, %c0_i32_8 : i32
    %11 = arith.extui %10 : i1 to i32
    %c0_i32_9 = arith.constant 0 : i32
    %12 = arith.cmpi ne, %11, %c0_i32_9 : i32
    scf.if %12 {
      %c0_10 = arith.constant 0 : index
      %c0_11 = arith.constant 0 : index
      %13 = vector.load %arg7[%c0_10, %c0_11] : memref<8x128xf32, #tpu.memory_space<vmem>>, vector<8x128xf32>
      %c0_12 = arith.constant 0 : index
      %c0_13 = arith.constant 0 : index
      %14 = vector.load %arg5[%c0_12, %c0_13] : memref<1x128xf32, #tpu.memory_space<vmem>>, vector<1x128xf32>
      %15 = vector.broadcast %14 : vector<1x128xf32> to vector<8x128xf32>
      %16 = arith.addf %13, %15 : vector<8x128xf32>
      %c0_14 = arith.constant 0 : index
      %c0_15 = arith.constant 0 : index
      %17 = vector.load %arg6[%c0_14, %c0_15] : memref<8x128xf32, #tpu.memory_space<vmem>>, vector<8x128xf32>
      tpu.vector_store %arg6[%c0_14, %c0_15], %16 {strides = array<i32>} : memref<8x128xf32, #tpu.memory_space<vmem>>, vector<8x128xf32>,
    } else {
    }
    return
  }
  func.func @transform_0(%arg0: i32, %arg1: i32, %arg2: i32) -> (i32, i32) {
    %c0_i32 = arith.constant 0 : i32
    return %arg0, %arg2 : i32, i32
  }
  func.func @transform_1(%arg0: i32, %arg1: i32, %arg2: i32) -> (i32, i32) {
    %c0_i32 = arith.constant 0 : i32
    return %arg2, %arg1 : i32, i32
  }
  func.func @transform_2(%arg0: i32, %arg1: i32, %arg2: i32) -> (i32, i32) {
    %c0_i32 = arith.constant 0 : i32
    %c0_i32_0 = arith.constant 0 : i32
    return %c0_i32, %arg1 : i32, i32
  }
  func.func @transform_3(%arg0: i32, %arg1: i32, %arg2: i32) -> (i32, i32) {
    %c0_i32 = arith.constant 0 : i32
    return %arg0, %arg1 : i32, i32
  }
}

</mosaic_0001>

<bundles_post_ra>
// kernel: tpu_custom_call.1
= control target key start
LH: loop header
LB: loop body
LE: loop exit
PB: predicated region body
PF: predicated region fallthrough
CT: control target
= control target key end

     0   :  { %8 = vsyncpa [#allocation4], 0  ;;  %s321_s0 = inlined_call_operand.hbm [shape: f32[8,128], index: 0, kind: input, shape index: {}]   ;;  %s322_s1 = inlined_call_operand.hbm [shape: bf16[128,128], index: 1, kind: input, shape index: {}]   ;;  %s323_s2 = inlined_call_operand.vmem [shape: f32[1,128], index: 2, kind: input, shape index: {}]   ;;  %s324_s3 = inlined_call_operand.hbm [shape: f32[8,128], index: 3, kind: output, shape index: {}]  }
   0x1   :  { %9 = vsyncpa [#allocation7], 0 }
   0x2   :  { %10 = vsyncpa [#allocation5], 0  ;;  %s16_s14 = sshll.u32 %s321_s0, 4  ;;  %s284_s15 = smov [#allocation3]   ;;  %s17_s14 = int_to_ptr.hbm [resolvable:$true] %s16_s14 }
   0x3   :  { %s18_s16 = sshll.u32 %s284_s15, 4  ;;  %s26_s19 = sshll.u32 %s322_s1, 4  ;;  %s19_s16 = int_to_ptr.vmem [resolvable:$true] %s18_s16  ;;  %s27_s19 = int_to_ptr.hbm [resolvable:$true] %s26_s19 }
   0x4   :  { %21 = dma.hbm_to_vmem [thread:$0]  %s17_s14, 128, %s19_s16, [#allocation4]  }
   0x5   :  { %s285_s20 = smov [#allocation6]   ;;  %s286_s22 = smov 64  }
   0x6   :  { %s28_s21 = sshll.u32 %s285_s20, 4  ;;  %s287_s23 = smov 4   ;;  %s29_s21 = int_to_ptr.vmem [resolvable:$true] %s28_s21 }
   0x7   :  { %34 = dma.hbm_to_vmem [thread:$0]  %s27_s19, 1024, %s29_s21, [#allocation7], %s286_s22, %s286_s22, %s287_s23  }
   0x8   :  { %278 = dma.done.wait [#allocation4], 128  }
   0x9   :  { %279 = vsyncadd [#allocation4], 4294967168 }
   0xa   :  { %280 = dma.done.wait [#allocation7], 1024  }
   0xb   :  { %281 = vsyncadd [#allocation7], 4294966272  ;;  %v199_v0 = vld [vmem:[#allocation6 + $0x38] sm:$0xff]  ;;  %v198_v1 = vld [vmem:[#allocation6 + $0x30] sm:$0xff]  ;;  %s288_s24 = smov [#allocation8]   ;;  %s149_s28 = sshll.u32 %s324_s3, 4  ;;  %s150_s28 = int_to_ptr.hbm [resolvable:$true] %s149_s28 }
   0xc   :  { %117 = vmatpush.bf16.msra.mxu0 %v199_v0  ;;  %v197_v2 = vld [vmem:[#allocation6 + $0x28] sm:$0xff]  ;;  %v196_v3 = vld [vmem:[#allocation6 + $0x20] sm:$0xff]  ;;  %v195_v4 = vld [vmem:[#allocation6 + $0x18] sm:$0xff]  ;;  %s147_s25 = sshll.u32 %s288_s24, 4  ;;  %s148_s25 = int_to_ptr.vmem [resolvable:$true] %s147_s25 }
   0xd   :  { %v194_v5 = vld [vmem:[#allocation6 + $0x10] sm:$0xff]  ;;  %v193_v6 = vld [vmem:[#allocation6 + $0x8] sm:$0xff]  ;;  %v192_v7 = vld [vmem:[#allocation6] sm:$0xff] }
   0xe   :  { %v50_v8 = vld [vmem:[#allocation3] sm:$0xff] }
   0xf   :  { %v52_v9 = vpack.c.bf16 %v50_v8, %v50_v8  ;;  %v205_v10 = vld [vmem:[%s323_s2] ss:$0 sm:$0xff] }
  0x10   :  { %118 = vmatpush.bf16.msra.mxu0 %v198_v1 }
  0x14   :  { %119 = vmatpush.bf16.msra.mxu0 %v197_v2 }
  0x18   :  { %120 = vmatpush.bf16.msra.mxu0 %v196_v3 }
  0x1c   :  { %121 = vmatpush.bf16.msra.mxu0 %v195_v4 }
  0x20   :  { %122 = vmatpush.bf16.msra.mxu0 %v194_v5 }
  0x24   :  { %123 = vmatpush.bf16.msra.mxu0 %v193_v6 }
  0x28   :  { %124 = vmatpush.bf16.msra.mxu0 %v192_v7 }
  0x2b   :  { %125 = vmatmul.bf16.vlgmr.msra.gmra.mxu0 %v52_v9 }
  0xa8   :  { %v126_v11 = vpop.f32.mrf.mxu0 }
  0xa9   :  { %v140_v12 = vadd.f32 %v205_v10, %v126_v11 }
  0xab   :  { %141 = vst [vmem:[#allocation8] sm:$0xff] %v140_v12 }
  0xac   :  { %152 = dma.vmem_to_hbm [thread:$0]  %s148_s25, 128, %s150_s28, [#allocation5]  }
  0xb0   :  { %v128_v13 = vpop.f32.mrf.mxu0 }
  0xb1   :  { %282 = dma.done.wait [#allocation5], 128  }
  0xb2   :  { %283 = vsyncadd [#allocation5], 4294967168 }
  0xb3   :  { %157 = vsyncpa [#allocation4], 1 }
  0xb4   :  { %158 = vsyncpa [#allocation7], 1 }
  0xb5   :  { %159 = vsyncpa [#allocation5], 1 }

</bundles_post_ra>
